<compile_context>
chip_gen: v7x
topology: tpu7x:2x2x1
jax: 0.10.0
libtpu: 0.0.40
codegen_flags: <defaults>
</compile_context>

<pallas_src>
import functools

import jax
import jax.numpy as jnp
from jax.experimental import pallas as pl
from jax.experimental.pallas import tpu as pltpu

_STATIC_UNROLL_MAX = 16


def _round_up(x, m):
    return ((x + m - 1) // m) * m


def _cdiv(a, b):
    return (a + b - 1) // b


def _flow_step(k, z, ld, uhat_ref, w_ref, b_ref, wu_ref, d_axis):
    """One planar-flow update.

    z carries the feature dim D on axis `d_axis`:
      d_axis == 0 -> lane-dense layout (D, cb), batch on lanes
      d_axis == 1 -> natural layout   (cb, D), batch on sublanes
    """
    u = uhat_ref[k].astype(jnp.float32)            # (D, 1) or (1, D)
    w = w_ref[k].astype(jnp.float32)               # (D, 1) or (1, D)
    b = b_ref[k]                                   # scalar from SMEM
    wu = wu_ref[k]                                 # scalar from SMEM: dot(w, uhat)

    # zwb = w . z + b   (per-sample scalar)
    zwb = jnp.sum(z * w, axis=d_axis, keepdims=True) + b
    t = jnp.tanh(zwb)

    z = z + u * t                                  # planar update

    # psi_u = (1 - tanh^2) * dot(w, uhat)
    psi_u = (1.0 - t * t) * wu
    ld = ld + jnp.log(jnp.abs(1.0 + psi_u) + 1e-08)
    return z, ld


def nf_kernel(b_ref, wu_ref, uhat_ref, w_ref, z_ref, fz_ref, ld_ref, *,
              n_flows, cb, n_chunks, lane_dense):
    d_axis = 0 if lane_dense else 1

    def run_flows(z, ld):
        if n_flows <= _STATIC_UNROLL_MAX:
            for k in range(n_flows):               # static unroll (small n_flows)
                z, ld = _flow_step(k, z, ld, uhat_ref, w_ref, b_ref, wu_ref, d_axis)
            return z, ld

        def body(k, carry):
            zk, ldk = carry
            return _flow_step(k, zk, ldk, uhat_ref, w_ref, b_ref, wu_ref, d_axis)

        # Partial unroll keeps cross-iteration co-issue visible to the scheduler.
        return jax.lax.fori_loop(0, n_flows, body, (z, ld), unroll=2)

    def process_chunk(off):
        rows = pl.ds(off, cb)
        zc = z_ref[rows, :].astype(jnp.float32)    # (cb, D), cast before any relayout
        if lane_dense:
            z = jnp.transpose(zc)                  # (D, cb): batch on lanes (XLU)
            ld = jnp.zeros((1, cb), jnp.float32)
        else:
            z = zc                                 # (cb, D): no relayout at all
            ld = jnp.zeros((cb, 1), jnp.float32)

        z, ld = run_flows(z, ld)

        if lane_dense:
            fz_ref[rows, :] = jnp.transpose(z).astype(fz_ref.dtype)
            ld_ref[:, pl.ds(off, cb)] = ld         # lane-dense logdet store
        else:
            fz_ref[rows, :] = z.astype(fz_ref.dtype)
            ld_ref[rows, :] = ld

    if n_chunks == 1:
        process_chunk(0)
    else:
        # Rolled chunk loop bounds the vreg live range to one chunk.
        def chunk_body(c, carry):
            process_chunk(pl.multiple_of(c * cb, cb))
            return carry

        jax.lax.fori_loop(0, n_chunks, chunk_body, 0)


def normalizing_flows(z, U, W, Bp):
    """z: (B, D); U, W: (n_flows, D); Bp: (n_flows, 1).

    Returns (f_z: (B, D) in z.dtype, logdet_sum: (B,) f32)."""
    Bsz, D = z.shape
    n_flows = U.shape[0]
    itemsize = jnp.dtype(z.dtype).itemsize

    # ---- batch-independent per-flow preprocessing (tiny; done once) -----------
    Uf = U.astype(jnp.float32)
    Wf = W.astype(jnp.float32)
    uw = jnp.sum(Uf * Wf, axis=-1)                               # (n_flows,)
    muw = -1.0 + jax.nn.softplus(uw)
    uhat = Uf + ((muw - uw) / jnp.sum(Wf * Wf, axis=-1))[:, None] * Wf
    wu = jnp.sum(Wf * uhat, axis=-1)                             # dot(w, uhat)
    b = Bp.reshape(-1).astype(jnp.float32)                       # flat 1-D for SMEM

    # ---- tiling ----------------------------------------------------------------
    lane_dense_ok = (D % 8 == 0) and (D <= 512)
    if lane_dense_ok:
        # Rows per in-kernel chunk: keep ~16K live f32 elements (<= ~16 vregs)
        # once the chunk is transposed to (D, cb).
        cb = max(128, min(512, ((16 * 1024) // max(D, 1)) // 128 * 128))
    else:
        cb = 128                                  # natural-layout fallback chunk

    bytes_per_row = 2 * D * itemsize + 4          # z in + f_z out + logdet
    if Bsz > cb:
        rows_target = (6 << 20) // bytes_per_row           # ~6 MiB HBM / grid step
        rows_vmem = (36 << 20) // (2 * bytes_per_row)      # dbl-buffered tiles <= ~36 MiB
        tb_cap = max(cb, (min(rows_target, rows_vmem) // cb) * cb)
        # Guarantee >= 2 grid tiles whenever possible (v7x megacore).
        TB = max(cb, min(tb_cap, _round_up(_cdiv(Bsz, 2), cb)))
        cb_eff, n_chunks = cb, TB // cb
    else:
        TB, cb_eff, n_chunks = Bsz, Bsz, 1        # single full block (tiny batch)

    lane_dense = lane_dense_ok and (cb_eff % 128 == 0)
    grid = (_cdiv(Bsz, TB),)                      # ragged edge masked by Pallas

    if lane_dense:
        uhat_p = uhat[:, :, None]                 # (n_flows, D, 1) columns
        w_p = Wf[:, :, None]
        ld_shape = (1, Bsz)
        ld_spec = pl.BlockSpec((1, TB), lambda i: (0, i))
    else:
        uhat_p = uhat[:, None, :]                 # (n_flows, 1, D) rows
        w_p = Wf[:, None, :]
        ld_shape = (Bsz, 1)
        ld_spec = pl.BlockSpec((TB, 1), lambda i: (i, 0))

    # Enough for the double-buffered tiles + headroom, but v7x-safe (<= 48 MiB).
    vmem_limit = int(min(48 << 20, max(32 << 20, 4 * TB * bytes_per_row)))

    fz, ld = pl.pallas_call(
        functools.partial(nf_kernel, n_flows=n_flows, cb=cb_eff,
                          n_chunks=n_chunks, lane_dense=lane_dense),
        out_shape=(
            jax.ShapeDtypeStruct((Bsz, D), z.dtype),
            jax.ShapeDtypeStruct(ld_shape, jnp.float32),
        ),
        grid=grid,
        in_specs=[
            pl.BlockSpec((n_flows,), lambda i: (0,),
                         memory_space=pltpu.MemorySpace.SMEM),       # b
            pl.BlockSpec((n_flows,), lambda i: (0,),
                         memory_space=pltpu.MemorySpace.SMEM),       # dot(w, uhat)
            pl.BlockSpec(uhat_p.shape, lambda i: (0, 0, 0)),         # uhat
            pl.BlockSpec(w_p.shape, lambda i: (0, 0, 0)),            # w
            pl.BlockSpec((TB, D), lambda i: (i, 0)),                 # z (natural layout)
        ],
        out_specs=(
            pl.BlockSpec((TB, D), lambda i: (i, 0)),                 # f_z (natural layout)
            ld_spec,                                                 # logdet sum
        ),
        compiler_params=pltpu.CompilerParams(
            dimension_semantics=("parallel",),
            vmem_limit_bytes=vmem_limit,
        ),
    )(b, wu, uhat_p, w_p, z)

    return fz, ld.reshape(Bsz)


def normalizing_flows_ref(z, U, W, Bp):
    """Pure-JAX reference mirroring the PyTorch forward (f32 elementwise math,
    so it is comparable to the kernel at tight tolerances on TPU)."""
    ld_sum = jnp.zeros((z.shape[0],), jnp.float32)
    for k in range(U.shape[0]):
        u, w, bk = U[k], W[k], Bp[k, 0]
        uw = jnp.sum(u * w)
        muw = -1.0 + jax.nn.softplus(uw)
        uhat = u + (muw - uw) * w / jnp.sum(w ** 2)
        zwb = jnp.sum(z * w[None, :], axis=1) + bk
        tz = jnp.tanh(zwb)
        z = z + uhat[None, :] * tz[:, None]
        psi = (1.0 - tz ** 2)[:, None] * w[None, :]
        psi_u = jnp.sum(psi * uhat[None, :], axis=1)
        ld_sum = ld_sum + jnp.log(jnp.abs(1.0 + psi_u) + 1e-08)
    return z, ld_sum


if __name__ == "__main__":
    in_features = 32   # D (latent dim)
    batch = 8          # B
    n_flows = 2

    key = jax.random.PRNGKey(0)
    kz, ku, kw = jax.random.split(key, 3)

    # Deterministic parameter init (mirrors torch.randn for u, w; ones for b).
    z = jax.random.normal(kz, (batch, in_features), dtype=jnp.float32)
    U = jax.random.normal(ku, (n_flows, in_features), dtype=jnp.float32)
    W = jax.random.normal(kw, (n_flows, in_features), dtype=jnp.float32)
    Bp = jnp.ones((n_flows, 1), dtype=jnp.float32)

    fz, ld = normalizing_flows(z, U, W, Bp)
    jax.block_until_ready((fz, ld))

    fz_ref, ld_ref = normalizing_flows_ref(z, U, W, Bp)
    assert jnp.allclose(fz, fz_ref, atol=1e-5, rtol=1e-5)
    assert jnp.allclose(ld, ld_ref, atol=1e-5, rtol=1e-5)

    print("KERNEL_OK")
</pallas_src>

<mosaic_0001>
module attributes {stable_mosaic.version = 11 : i64} {
  func.func @nf_kernel(%arg0: i32, %arg1: memref<2xf32, #tpu.memory_space<smem>>, %arg2: memref<2xf32, #tpu.memory_space<smem>>, %arg3: memref<2x1x32xf32, #tpu.memory_space<vmem>>, %arg4: memref<2x1x32xf32, #tpu.memory_space<vmem>>, %arg5: memref<8x32xf32, #tpu.memory_space<vmem>>, %arg6: memref<8x32xf32, #tpu.memory_space<vmem>>, %arg7: memref<8x1xf32, #tpu.memory_space<vmem>>) attributes {dimension_semantics = [#tpu.dimension_semantics<parallel>], iteration_bounds = array<i64: 1>, scalar_prefetch = 0 : i64, scratch_operands = 0 : i64, tpu.core_type = #tpu.core_type<tc>, window_params = [{transform_indices = @transform_0, window_bounds = array<i64: 2>}, {transform_indices = @transform_1, window_bounds = array<i64: 2>}, {pipeline_mode = #tpu.pipeline_mode<synchronous>, transform_indices = @transform_2, window_bounds = array<i64: 2, 1, 32>}, {pipeline_mode = #tpu.pipeline_mode<synchronous>, transform_indices = @transform_3, window_bounds = array<i64: 2, 1, 32>}, {transform_indices = @transform_4, window_bounds = array<i64: 8, 32>}, {transform_indices = @transform_5, window_bounds = array<i64: 8, 32>}, {transform_indices = @transform_6, window_bounds = array<i64: 8, 1>}]} {
    %c0 = arith.constant 0 : index
    %c0_0 = arith.constant 0 : index
    %0 = vector.load %arg5[%c0, %c0_0] : memref<8x32xf32, #tpu.memory_space<vmem>>, vector<8x32xf32>
    %cst = arith.constant 0.000000e+00 : f32
    %1 = vector.broadcast %cst : f32 to vector<8x1xf32>
    %c0_1 = arith.constant 0 : index
    %c0_2 = arith.constant 0 : index
    %c0_3 = arith.constant 0 : index
    %2 = vector.load %arg3[%c0_1, %c0_2, %c0_3] : memref<2x1x32xf32, #tpu.memory_space<vmem>>, vector<1x1x32xf32>
    %3 = vector.shape_cast %2 : vector<1x1x32xf32> to vector<1x32xf32>
    %c0_4 = arith.constant 0 : index
    %c0_5 = arith.constant 0 : index
    %c0_6 = arith.constant 0 : index
    %4 = vector.load %arg4[%c0_4, %c0_5, %c0_6] : memref<2x1x32xf32, #tpu.memory_space<vmem>>, vector<1x1x32xf32>
    %5 = vector.shape_cast %4 : vector<1x1x32xf32> to vector<1x32xf32>
    %c0_7 = arith.constant 0 : index
    %6 = memref.load %arg1[%c0_7] : memref<2xf32, #tpu.memory_space<smem>>
    %c0_8 = arith.constant 0 : index
    %7 = memref.load %arg2[%c0_8] : memref<2xf32, #tpu.memory_space<smem>>
    %8 = vector.broadcast %5 : vector<1x32xf32> to vector<8x32xf32>
    %9 = arith.mulf %0, %8 : vector<8x32xf32>
    %cst_9 = arith.constant dense<0.000000e+00> : vector<8xf32>
    %10 = vector.multi_reduction <add>, %9, %cst_9 [1] : vector<8x32xf32> to vector<8xf32>
    %11 = vector.shape_cast %10 : vector<8xf32> to vector<8x1xf32>
    %12 = vector.broadcast %6 : f32 to vector<8x1xf32>
    %13 = arith.addf %11, %12 : vector<8x1xf32>
    %14 = math.tanh %13 : vector<8x1xf32>
    %15 = vector.broadcast %3 : vector<1x32xf32> to vector<8x32xf32>
    %16 = vector.broadcast %14 : vector<8x1xf32> to vector<8x32xf32>
    %17 = arith.mulf %15, %16 : vector<8x32xf32>
    %18 = arith.addf %0, %17 : vector<8x32xf32>
    %19 = arith.mulf %14, %14 : vector<8x1xf32>
    %cst_10 = arith.constant 1.000000e+00 : f32
    %20 = vector.broadcast %cst_10 : f32 to vector<8x1xf32>
    %21 = arith.subf %20, %19 : vector<8x1xf32>
    %22 = vector.broadcast %7 : f32 to vector<8x1xf32>
    %23 = arith.mulf %21, %22 : vector<8x1xf32>
    %cst_11 = arith.constant 1.000000e+00 : f32
    %24 = vector.broadcast %cst_11 : f32 to vector<8x1xf32>
    %25 = arith.addf %24, %23 : vector<8x1xf32>
    %26 = math.absf %25 : vector<8x1xf32>
    %cst_12 = arith.constant 9.99999993E-9 : f32
    %27 = vector.broadcast %cst_12 : f32 to vector<8x1xf32>
    %28 = arith.addf %26, %27 : vector<8x1xf32>
    %29 = math.log %28 : vector<8x1xf32>
    %30 = arith.addf %1, %29 : vector<8x1xf32>
    %c1 = arith.constant 1 : index
    %c0_13 = arith.constant 0 : index
    %c0_14 = arith.constant 0 : index
    %31 = vector.load %arg3[%c1, %c0_13, %c0_14] : memref<2x1x32xf32, #tpu.memory_space<vmem>>, vector<1x1x32xf32>
    %32 = vector.shape_cast %31 : vector<1x1x32xf32> to vector<1x32xf32>
    %c1_15 = arith.constant 1 : index
    %c0_16 = arith.constant 0 : index
    %c0_17 = arith.constant 0 : index
    %33 = vector.load %arg4[%c1_15, %c0_16, %c0_17] : memref<2x1x32xf32, #tpu.memory_space<vmem>>, vector<1x1x32xf32>
    %34 = vector.shape_cast %33 : vector<1x1x32xf32> to vector<1x32xf32>
    %c1_18 = arith.constant 1 : index
    %35 = memref.load %arg1[%c1_18] : memref<2xf32, #tpu.memory_space<smem>>
    %c1_19 = arith.constant 1 : index
    %36 = memref.load %arg2[%c1_19] : memref<2xf32, #tpu.memory_space<smem>>
    %37 = vector.broadcast %34 : vector<1x32xf32> to vector<8x32xf32>
    %38 = arith.mulf %18, %37 : vector<8x32xf32>
    %cst_20 = arith.constant dense<0.000000e+00> : vector<8xf32>
    %39 = vector.multi_reduction <add>, %38, %cst_20 [1] : vector<8x32xf32> to vector<8xf32>
    %40 = vector.shape_cast %39 : vector<8xf32> to vector<8x1xf32>
    %41 = vector.broadcast %35 : f32 to vector<8x1xf32>
    %42 = arith.addf %40, %41 : vector<8x1xf32>
    %43 = math.tanh %42 : vector<8x1xf32>
    %44 = vector.broadcast %32 : vector<1x32xf32> to vector<8x32xf32>
    %45 = vector.broadcast %43 : vector<8x1xf32> to vector<8x32xf32>
    %46 = arith.mulf %44, %45 : vector<8x32xf32>
    %47 = arith.addf %18, %46 : vector<8x32xf32>
    %48 = arith.mulf %43, %43 : vector<8x1xf32>
    %cst_21 = arith.constant 1.000000e+00 : f32
    %49 = vector.broadcast %cst_21 : f32 to vector<8x1xf32>
    %50 = arith.subf %49, %48 : vector<8x1xf32>
    %51 = vector.broadcast %36 : f32 to vector<8x1xf32>
    %52 = arith.mulf %50, %51 : vector<8x1xf32>
    %cst_22 = arith.constant 1.000000e+00 : f32
    %53 = vector.broadcast %cst_22 : f32 to vector<8x1xf32>
    %54 = arith.addf %53, %52 : vector<8x1xf32>
    %55 = math.absf %54 : vector<8x1xf32>
    %cst_23 = arith.constant 9.99999993E-9 : f32
    %56 = vector.broadcast %cst_23 : f32 to vector<8x1xf32>
    %57 = arith.addf %55, %56 : vector<8x1xf32>
    %58 = math.log %57 : vector<8x1xf32>
    %59 = arith.addf %30, %58 : vector<8x1xf32>
    %c0_24 = arith.constant 0 : index
    %c0_25 = arith.constant 0 : index
    %60 = vector.load %arg6[%c0_24, %c0_25] : memref<8x32xf32, #tpu.memory_space<vmem>>, vector<8x32xf32>
    tpu.vector_store %arg6[%c0_24, %c0_25], %47 {strides = array<i32>} : memref<8x32xf32, #tpu.memory_space<vmem>>, vector<8x32xf32>,
    %c0_26 = arith.constant 0 : index
    %c0_27 = arith.constant 0 : index
    %61 = vector.load %arg7[%c0_26, %c0_27] : memref<8x1xf32, #tpu.memory_space<vmem>>, vector<8x1xf32>
    tpu.vector_store %arg7[%c0_26, %c0_27], %59 {strides = array<i32>} : memref<8x1xf32, #tpu.memory_space<vmem>>, vector<8x1xf32>,
    return
  }
  func.func @transform_0(%arg0: i32) -> i32 {
    %c0_i32 = arith.constant 0 : i32
    %c0_i32_0 = arith.constant 0 : i32
    return %c0_i32 : i32
  }
  func.func @transform_1(%arg0: i32) -> i32 {
    %c0_i32 = arith.constant 0 : i32
    %c0_i32_0 = arith.constant 0 : i32
    return %c0_i32 : i32
  }
  func.func @transform_2(%arg0: i32) -> (i32, i32, i32) {
    %c0_i32 = arith.constant 0 : i32
    %c0_i32_0 = arith.constant 0 : i32
    %c0_i32_1 = arith.constant 0 : i32
    %c0_i32_2 = arith.constant 0 : i32
    return %c0_i32, %c0_i32_0, %c0_i32_1 : i32, i32, i32
  }
  func.func @transform_3(%arg0: i32) -> (i32, i32, i32) {
    %c0_i32 = arith.constant 0 : i32
    %c0_i32_0 = arith.constant 0 : i32
    %c0_i32_1 = arith.constant 0 : i32
    %c0_i32_2 = arith.constant 0 : i32
    return %c0_i32, %c0_i32_0, %c0_i32_1 : i32, i32, i32
  }
  func.func @transform_4(%arg0: i32) -> (i32, i32) {
    %c0_i32 = arith.constant 0 : i32
    %c0_i32_0 = arith.constant 0 : i32
    return %arg0, %c0_i32 : i32, i32
  }
  func.func @transform_5(%arg0: i32) -> (i32, i32) {
    %c0_i32 = arith.constant 0 : i32
    %c0_i32_0 = arith.constant 0 : i32
    return %arg0, %c0_i32 : i32, i32
  }
  func.func @transform_6(%arg0: i32) -> (i32, i32) {
    %c0_i32 = arith.constant 0 : i32
    %c0_i32_0 = arith.constant 0 : i32
    return %arg0, %c0_i32 : i32, i32
  }
}

</mosaic_0001>

<bundles_post_ra>
// kernel: tpu_custom_call.1
= control target key start
LH: loop header
LB: loop body
LE: loop exit
PB: predicated region body
PF: predicated region fallthrough
CT: control target
= control target key end

     0   :  { %12 = vsyncpa [#allocation4], 0  ;;  %s298_s0 = inlined_call_operand.hbm [shape: f32[2], index: 0, kind: input, shape index: {}]   ;;  %s299_s1 = inlined_call_operand.vmem [shape: f32[2], index: 1, kind: input, shape index: {}]   ;;  %s300_s2 = inlined_call_operand.vmem [shape: f32[2,1,32], index: 2, kind: input, shape index: {}]   ;;  %s301_s3 = inlined_call_operand.vmem [shape: f32[2,1,32], index: 3, kind: input, shape index: {}]   ;;  %s302_s4 = inlined_call_operand.vmem [shape: f32[8,32], index: 4, kind: input, shape index: {}]   ;;  %s303_s5 = inlined_call_operand.hbm [shape: f32[8,32], index: 5, kind: output, shape index: {0}]   ;;  %s304_s6 = inlined_call_operand.vmem [shape: f32[8,1], index: 6, kind: output, shape index: {1}]  }
   0x1   :  { %13 = vsyncpa [#allocation5], 0 }
   0x2   :  { %14 = vsyncpa [#allocation3], 0  ;;  %s29_s23 = sshll.u32 %s299_s1, 4  ;;  %s162_s26 = scalar_lea.hbm %s298_s0, 16  ;;  %s30_s23 = int_to_ptr.vmem [resolvable:$true] %s29_s23 }
   0x3   :  { %p163_p0 = scmp.ne.s32.totalorder %s298_s0, %s162_s26  ;;  %p166_p1 = scmp.lt.u32.totalorder %s162_s26, %s298_s0 }
   0x5   :  { %p168_p2 = pnand %p166_p1, %p163_p0 }
   0x7   :  { %171 = shalt.err (!%p168_p2)
}
   0x8   :  { %s212_s7 = smov [#allocation2]   ;;  %s172_s1 = scalar_lea.vmem %s30_s23, 16 }
   0x9   :  { %22 = dma.hbm_to_smem %s298_s0, 16, %s212_s7, [#allocation4]  }
   0xa   :  { %p173_p3 = scmp.ne.s32.totalorder %s30_s23, %s172_s1  ;;  %p177_p4 = scmp.lt.s32.totalorder %s30_s23, %s30_s23 }
   0xb   :  { %p178_p5 = scmp.lt.s32.totalorder %s172_s1, %s172_s1 }
   0xd   :  { %p179_p6 = por %p178_p5, %p177_p4 }
   0xf   :  { %p180_p7 = pnand %p179_p6, %p173_p3 }
  0x11   :  { %183 = shalt.err (!%p180_p7)
}
  0x12   :  { %s213_s10 = smov [#allocation6]  }
  0x13   :  { %32 = dma.vmem_to_smem %s30_s23, 16, %s213_s10, [#allocation5]  }
  0x14   :  { %206 = dma.done.wait [#allocation4], 16  }
  0x15   :  { %207 = vsyncadd [#allocation4], 4294967280 }
  0x16   :  { %208 = dma.done.wait [#allocation5], 16  }
  0x17   :  { %209 = vsyncadd [#allocation5], 4294967280 }
  0x18   :  { %45 = sfence }
  0x19   :  { %v46_v0 = vld [vmem:[%s302_s4] sm:$0xff]  ;;  %vm58_vm0 = vcmask 261120   ;;  %s49_s14 = sld [smem:[#allocation2]]  ;;  %s147_s18 = sld [smem:[#allocation2 + $0x1]] }
  0x1a   :  { %v143_v1 = vld [vmem:[%s301_s3] ss:$0 sm:$0xff]  ;;  %v149_v10 = vld [vmem:[%s301_s3 + $0x1] ss:$0 sm:$0xff]  ;;  %s50_s19 = sld [smem:[#allocation6]]  ;;  %s148_s20 = sld [smem:[#allocation6 + $0x1]] }
  0x1b   :  { %v57_v2 = vmul.f32 %v143_v1, %v46_v0  ;;  %v144_v7 = vld [vmem:[%s300_s2] ss:$0 sm:$0xff]  ;;  %v150_v21 = vld [vmem:[%s300_s2 + $0x1] ss:$0 sm:$0xff]  ;;  %s214_s3 = smov [#allocation7]  }
  0x1c   :  { %s129_s23 = sshll.u32 %s214_s3, 4  ;;  %s130_s23 = int_to_ptr.vmem [resolvable:$true] %s129_s23 }
  0x1d   :  { %v59_v3 = vsel %vm58_vm0, %v57_v2, 0.0  ;;  %s184_s24 = scalar_lea.vmem %s130_s23, 128  ;;  %p189_p9 = scmp.lt.s32.totalorder %s130_s23, %s130_s23 }
  0x1e   :  { %60 = vadd.xlane.f32.xlu0 %v59_v3  ;;  %p185_p8 = scmp.ne.s32.totalorder %s130_s23, %s184_s24  ;;  %p190_p10 = scmp.lt.s32.totalorder %s184_s24, %s184_s24 }
  0x1f   :  { %v62_v4 = vstv %s49_s14  ;;  %v99_v14 = vstv %s147_s18 }
  0x20   :  { %v75_v19 = vstv %s50_s19  ;;  %v112_v26 = vstv %s148_s20  ;;  %p191_p11 = por %p190_p10, %p189_p9 }
  0x22   :  { %p192_p12 = pnand %p191_p11, %p185_p8 }
  0xab   :  { %v61_v5 = vpop.xlane.xlu0 %60 }
  0xac   :  { %v63_v6 = vadd.f32 %v62_v4, %v61_v5 }
  0xae   :  { %154 = vtanh.f32 %v63_v6 }
  0xb8   :  { %v155_v8 = vpop.eup %154 }
  0xb9   :  { %v71_v9 = vmul.f32 %v155_v8, %v144_v7  ;;  %v73_v15 = vmul.f32 %v155_v8, %v155_v8 }
  0xbb   :  { %v72_v11 = vadd.f32 %v71_v9, %v46_v0  ;;  %v74_v18 = vsub.f32 1.0, %v73_v15 }
  0xbd   :  { %v95_v12 = vmul.f32 %v149_v10, %v72_v11  ;;  %v76_v20 = vmul.f32 %v75_v19, %v74_v18 }
  0xbf   :  { %v96_v13 = vsel %vm58_vm0, %v95_v12, 0.0  ;;  %v77_v22 = vadd.f32 1.0, %v76_v20 }
  0xc0   :  { %97 = vadd.xlane.f32.xlu0 %v96_v13 }
  0xc1   :  { %v78_v27 = vand.u32 2147483647, %v77_v22 }
 0x14d   :  { %v98_v16 = vpop.xlane.xlu0 %97 }
 0x14e   :  { %v100_v17 = vadd.f32 %v99_v14, %v98_v16 }
 0x150   :  { %156 = vtanh.f32 %v100_v17 }
 0x15a   :  { %v157_v23 = vpop.eup %156 }
 0x15b   :  { %v110_v24 = vmul.f32 %v157_v23, %v157_v23  ;;  %v108_v25 = vmul.f32 %v157_v23, %v150_v21 }
 0x15d   :  { %v111_v28 = vsub.f32 1.0, %v110_v24  ;;  %v109_v29 = vadd.f32 %v108_v25, %v72_v11 }
 0x15f   :  { %v113_v30 = vmul.f32 %v112_v26, %v111_v28  ;;  %120 = vst.msk [vmem:[#allocation7] sm:$0xff] %vm58_vm0, %v109_v29 }
 0x160   :  { %195 = shalt.err (!%p192_p12)
}
 0x161   :  { %s196_s26 = scalar_lea.hbm %s303_s5, 128 }
 0x162   :  { %p197_p13 = scmp.ne.s32.totalorder %s303_s5, %s196_s26  ;;  %p200_p0 = scmp.lt.u32.totalorder %s196_s26, %s303_s5 }
 0x164   :  { %p202_p1 = pnand %p200_p0, %p197_p13 }
 0x166   :  { %205 = shalt.err (!%p202_p1)
}
 0x167   :  { %132 = dma.vmem_to_hbm [thread:$0]  %s130_s23, 128, %s303_s5, [#allocation3]   ;;  %v79_v31 = vadd.f32 1e-08, %v78_v27  ;;  %v114_v32 = vadd.f32 1.0, %v113_v30  ;;  %vm121_vm1 = vcmask 7168  }
 0x169   :  { %v115_v33 = vand.u32 2147483647, %v114_v32  ;;  %158 = vlog2.f32 %v79_v31 }
 0x16b   :  { %v116_v34 = vadd.f32 1e-08, %v115_v33 }
 0x16d   :  { %160 = vlog2.f32 %v116_v34 }
 0x173   :  { %v159_v35 = vpop.eup %158 }
 0x174   :  { %v81_v37 = vmul.f32 0.6931472, %v159_v35 }
 0x177   :  { %v161_v36 = vpop.eup %160 }
 0x178   :  { %v118_v38 = vmul.f32 0.6931472, %v161_v36 }
 0x17a   :  { %v119_v39 = vadd.f32 %v118_v38, %v81_v37 }
 0x17c   :  { %122 = vst.msk [vmem:[%s304_s6] sm:$0xff] %vm121_vm1, %v119_v39 }
 0x17d   :  { %210 = dma.done.wait [#allocation3], 128  }
 0x17e   :  { %211 = vsyncadd [#allocation3], 4294967168 }
 0x17f   :  { %140 = vsyncpa [#allocation3], 1 }
 0x180   :  { %141 = vsyncpa [#allocation4], 1 }
 0x181   :  { %142 = vsyncpa [#allocation5], 1 }

</bundles_post_ra>
